<compile_context>
chip_gen: v7x
topology: tpu7x:2x2x1
jax: 0.10.0
libtpu: 0.0.40
codegen_flags: <defaults>
</compile_context>

<pallas_src>
import functools

import jax
import jax.numpy as jnp
from jax.experimental import pallas as pl
from jax.experimental.pallas import tpu as pltpu


def relation_kernel(ft_ref, nb_ref, w1_ref, w2_ref, r_ref, out_ref):
    ft = ft_ref[...]                       # (tm, Dp) f32
    nb = nb_ref[...]                       # (tm, Dp) f32
    dp = r_ref.shape[-1]
    mxu_dt = w1_ref.dtype                  # f32 or bf16 (matmul-only cast)

    # Fused gamma|beta matmul -> (tm, 2*Dp), f32 accumulation on the MXU.
    gb = jnp.dot(ft.astype(mxu_dt), w1_ref[...],
                 preferred_element_type=jnp.float32)
    gb += jnp.dot(nb.astype(mxu_dt), w2_ref[...],
                  preferred_element_type=jnp.float32)
    gb = jnp.where(gb > 0, gb, 0.2 * gb)   # LeakyReLU(0.2)

    gamma = gb[:, :dp] + 1.0
    beta = gb[:, dp:]

    r_v = gamma * r_ref[...] + beta        # (tm, Dp) * (1, Dp) broadcast
    out_ref[...] = (ft + r_v - nb).astype(out_ref.dtype)   # residual in f32


@functools.partial(jax.jit, static_argnames=("tm", "use_bf16"))
def relation_forward(ft, neighbor, wg1, wg2, wb1, wb2, r, *, tm=256,
                     use_bf16=False):
    """ft, neighbor: (N, D) f32. Weights: (D, D) PyTorch (out, in). r: (1, D)."""
    N, D = ft.shape
    w_dtype = jnp.bfloat16 if use_bf16 else jnp.float32

    # Lane-dense feature dim (multiple of 128) and an exact row grid.
    dp = pl.cdiv(D, 128) * 128
    tm_eff = min(tm, pl.cdiv(N, 8) * 8)
    n_pad = pl.cdiv(N, tm_eff) * tm_eff

    ft_p = jnp.pad(ft.astype(jnp.float32), ((0, n_pad - N), (0, dp - D)))
    nb_p = jnp.pad(neighbor.astype(jnp.float32), ((0, n_pad - N), (0, dp - D)))
    r_p = jnp.pad(r.astype(jnp.float32), ((0, 0), (0, dp - D)))

    def fuse(w_gamma, w_beta):
        # PyTorch Linear computes x @ W^T.  Fuse the two transposed weights
        # along columns -> (Dp, 2*Dp): first Dp cols gamma, last Dp cols beta.
        w = jnp.zeros((dp, 2 * dp), jnp.float32)
        w = w.at[:D, :D].set(w_gamma.T.astype(jnp.float32))
        w = w.at[:D, dp:dp + D].set(w_beta.T.astype(jnp.float32))
        return w.astype(w_dtype)

    w1 = fuse(wg1, wb1)   # multiplies ft
    w2 = fuse(wg2, wb2)   # multiplies neighbor

    row_spec = pl.BlockSpec((tm_eff, dp), lambda i: (i, 0))
    w_spec = pl.BlockSpec((dp, 2 * dp), lambda i: (0, 0))   # constant block
    r_spec = pl.BlockSpec((1, dp), lambda i: (0, 0))

    # Explicit scoped-VMEM budget: double-buffered row tiles (f32), the two
    # fused weights (budgeted x2 in case the runtime double-buffers the
    # constant-index blocks), and headroom for the (tm, 2*Dp) f32 intermediate.
    w_itemsize = 2 if use_bf16 else 4
    vmem_need = (3 * 2 * tm_eff * dp * 4             # ft, nb, out tiles
                 + 2 * 2 * dp * 2 * dp * w_itemsize  # fused weights
                 + 2 * tm_eff * 2 * dp * 4           # gb intermediate
                 + 2 * dp * 4)                       # r
    vmem_limit = int(min(max(2 * vmem_need, 32 << 20), 48 << 20))

    cost = pl.CostEstimate(
        flops=8 * n_pad * dp * dp,
        transcendentals=0,
        bytes_accessed=3 * n_pad * dp * 4 + 2 * dp * 2 * dp * w_itemsize,
    )

    out_p = pl.pallas_call(
        relation_kernel,
        out_shape=jax.ShapeDtypeStruct((n_pad, dp), jnp.float32),
        grid_spec=pltpu.PrefetchScalarGridSpec(
            num_scalar_prefetch=0,
            grid=(n_pad // tm_eff,),
            in_specs=[row_spec, row_spec, w_spec, w_spec, r_spec],
            out_specs=row_spec,
        ),
        compiler_params=pltpu.CompilerParams(
            dimension_semantics=("parallel",),
            vmem_limit_bytes=vmem_limit,
        ),
        cost_estimate=cost,
    )(ft_p, nb_p, w1, w2, r_p)

    return out_p[:N, :D].astype(ft.dtype)


def _lrelu(x, slope=0.2):
    return jnp.where(x > 0, x, slope * x)


def relation_ref(ft, neighbor, wg1, wg2, wb1, wb2, r):
    gamma = _lrelu(ft @ wg1.T + neighbor @ wg2.T) + 1.0
    beta = _lrelu(ft @ wb1.T + neighbor @ wb2.T)
    r_v = gamma * r + beta
    return ft + r_v - neighbor


if __name__ == "__main__":
    key = jax.random.PRNGKey(0)
    N, D = 16, 32  # rows (nodes), in_features

    keys = jax.random.split(key, 7)
    stdv = 1.0 / jnp.sqrt(D)  # nn.Linear-like scale (deterministic synthetic)
    ft = jax.random.normal(keys[0], (N, D), dtype=jnp.float32)
    neighbor = jax.random.normal(keys[1], (N, D), dtype=jnp.float32)
    wg1 = jax.random.uniform(keys[2], (D, D), minval=-stdv, maxval=stdv)
    wg2 = jax.random.uniform(keys[3], (D, D), minval=-stdv, maxval=stdv)
    wb1 = jax.random.uniform(keys[4], (D, D), minval=-stdv, maxval=stdv)
    wb2 = jax.random.uniform(keys[5], (D, D), minval=-stdv, maxval=stdv)
    r = jax.random.uniform(keys[6], (1, D), minval=-stdv, maxval=stdv)

    ref = relation_ref(ft, neighbor, wg1, wg2, wb1, wb2, r)

    # f32 MXU path.
    out = jax.block_until_ready(
        relation_forward(ft, neighbor, wg1, wg2, wb1, wb2, r))
    assert out.shape == (N, D) and out.dtype == jnp.float32
    assert jnp.allclose(out, ref, atol=1e-5, rtol=1e-5)

    # bf16 MXU fast path (v6e/v7x); epilogue and residual remain f32.
    out_bf16 = jax.block_until_ready(
        relation_forward(ft, neighbor, wg1, wg2, wb1, wb2, r, use_bf16=True))
    assert jnp.allclose(out_bf16, ref, atol=5e-2, rtol=5e-2)

    print("KERNEL_OK")
</pallas_src>

<mosaic_0001>
module attributes {stable_mosaic.version = 11 : i64} {
  func.func @relation_kernel(%arg0: i32, %arg1: memref<16x128xf32, #tpu.memory_space<vmem>>, %arg2: memref<16x128xf32, #tpu.memory_space<vmem>>, %arg3: memref<128x256xf32, #tpu.memory_space<vmem>>, %arg4: memref<128x256xf32, #tpu.memory_space<vmem>>, %arg5: memref<1x128xf32, #tpu.memory_space<vmem>>, %arg6: memref<16x128xf32, #tpu.memory_space<vmem>>) attributes {dimension_semantics = [#tpu.dimension_semantics<parallel>], iteration_bounds = array<i64: 1>, scalar_prefetch = 0 : i64, scratch_operands = 0 : i64, tpu.core_type = #tpu.core_type<tc>, window_params = [{transform_indices = @transform_0, window_bounds = array<i64: 16, 128>}, {transform_indices = @transform_1, window_bounds = array<i64: 16, 128>}, {pipeline_mode = #tpu.pipeline_mode<synchronous>, transform_indices = @transform_2, window_bounds = array<i64: 128, 256>}, {pipeline_mode = #tpu.pipeline_mode<synchronous>, transform_indices = @transform_3, window_bounds = array<i64: 128, 256>}, {pipeline_mode = #tpu.pipeline_mode<synchronous>, transform_indices = @transform_4, window_bounds = array<i64: 1, 128>}, {transform_indices = @transform_5, window_bounds = array<i64: 16, 128>}]} {
    %c0 = arith.constant 0 : index
    %c0_0 = arith.constant 0 : index
    %0 = vector.load %arg1[%c0, %c0_0] : memref<16x128xf32, #tpu.memory_space<vmem>>, vector<16x128xf32>
    %c0_1 = arith.constant 0 : index
    %c0_2 = arith.constant 0 : index
    %1 = vector.load %arg2[%c0_1, %c0_2] : memref<16x128xf32, #tpu.memory_space<vmem>>, vector<16x128xf32>
    %c0_3 = arith.constant 0 : index
    %c0_4 = arith.constant 0 : index
    %2 = vector.load %arg3[%c0_3, %c0_4] : memref<128x256xf32, #tpu.memory_space<vmem>>, vector<128x256xf32>
    %cst = arith.constant dense<0.000000e+00> : vector<16x256xf32>
    %3 = tpu.matmul %0, %2, %cst {dimension_numbers = #tpu.dot_dimension_numbers<[1], [0], [0], [1], [0, 0, 1, 1], [], []>} : vector<16x128xf32>, vector<128x256xf32>, vector<16x256xf32> -> vector<16x256xf32>
    %c0_5 = arith.constant 0 : index
    %c0_6 = arith.constant 0 : index
    %4 = vector.load %arg4[%c0_5, %c0_6] : memref<128x256xf32, #tpu.memory_space<vmem>>, vector<128x256xf32>
    %cst_7 = arith.constant dense<0.000000e+00> : vector<16x256xf32>
    %5 = tpu.matmul %1, %4, %cst_7 {dimension_numbers = #tpu.dot_dimension_numbers<[1], [0], [0], [1], [0, 0, 1, 1], [], []>} : vector<16x128xf32>, vector<128x256xf32>, vector<16x256xf32> -> vector<16x256xf32>
    %6 = arith.addf %3, %5 : vector<16x256xf32>
    %cst_8 = arith.constant 0.000000e+00 : f32
    %7 = vector.broadcast %cst_8 : f32 to vector<16x256xf32>
    %8 = arith.cmpf ogt, %6, %7 : vector<16x256xf32>
    %cst_9 = arith.constant 2.000000e-01 : f32
    %9 = vector.broadcast %cst_9 : f32 to vector<16x256xf32>
    %10 = arith.mulf %9, %6 : vector<16x256xf32>
    %11 = arith.select %8, %6, %10 : vector<16x256xi1>, vector<16x256xf32>
    %12 = vector.extract_strided_slice %11 {offsets = [0, 0], sizes = [16, 128], strides = [1, 1]} : vector<16x256xf32> to vector<16x128xf32>
    %cst_10 = arith.constant 1.000000e+00 : f32
    %13 = vector.broadcast %cst_10 : f32 to vector<16x128xf32>
    %14 = arith.addf %12, %13 : vector<16x128xf32>
    %15 = vector.extract_strided_slice %11 {offsets = [0, 128], sizes = [16, 128], strides = [1, 1]} : vector<16x256xf32> to vector<16x128xf32>
    %c0_11 = arith.constant 0 : index
    %c0_12 = arith.constant 0 : index
    %16 = vector.load %arg5[%c0_11, %c0_12] : memref<1x128xf32, #tpu.memory_space<vmem>>, vector<1x128xf32>
    %17 = vector.broadcast %16 : vector<1x128xf32> to vector<16x128xf32>
    %18 = arith.mulf %14, %17 : vector<16x128xf32>
    %19 = arith.addf %18, %15 : vector<16x128xf32>
    %20 = arith.addf %0, %19 : vector<16x128xf32>
    %21 = arith.subf %20, %1 : vector<16x128xf32>
    %c0_13 = arith.constant 0 : index
    %c0_14 = arith.constant 0 : index
    %22 = vector.load %arg6[%c0_13, %c0_14] : memref<16x128xf32, #tpu.memory_space<vmem>>, vector<16x128xf32>
    tpu.vector_store %arg6[%c0_13, %c0_14], %21 {strides = array<i32>} : memref<16x128xf32, #tpu.memory_space<vmem>>, vector<16x128xf32>,
    return
  }
  func.func @transform_0(%arg0: i32) -> (i32, i32) {
    %c0_i32 = arith.constant 0 : i32
    %c0_i32_0 = arith.constant 0 : i32
    return %arg0, %c0_i32 : i32, i32
  }
  func.func @transform_1(%arg0: i32) -> (i32, i32) {
    %c0_i32 = arith.constant 0 : i32
    %c0_i32_0 = arith.constant 0 : i32
    return %arg0, %c0_i32 : i32, i32
  }
  func.func @transform_2(%arg0: i32) -> (i32, i32) {
    %c0_i32 = arith.constant 0 : i32
    %c0_i32_0 = arith.constant 0 : i32
    %c0_i32_1 = arith.constant 0 : i32
    return %c0_i32, %c0_i32_0 : i32, i32
  }
  func.func @transform_3(%arg0: i32) -> (i32, i32) {
    %c0_i32 = arith.constant 0 : i32
    %c0_i32_0 = arith.constant 0 : i32
    %c0_i32_1 = arith.constant 0 : i32
    return %c0_i32, %c0_i32_0 : i32, i32
  }
  func.func @transform_4(%arg0: i32) -> (i32, i32) {
    %c0_i32 = arith.constant 0 : i32
    %c0_i32_0 = arith.constant 0 : i32
    %c0_i32_1 = arith.constant 0 : i32
    return %c0_i32, %c0_i32_0 : i32, i32
  }
  func.func @transform_5(%arg0: i32) -> (i32, i32) {
    %c0_i32 = arith.constant 0 : i32
    %c0_i32_0 = arith.constant 0 : i32
    return %arg0, %c0_i32 : i32, i32
  }
}

</mosaic_0001>

<bundles_post_ra>
// kernel: relation_forward.1
= control target key start
LH: loop header
LB: loop body
LE: loop exit
PB: predicated region body
PF: predicated region fallthrough
CT: control target
= control target key end

     0   :  { %v387_v7 = vmov 0.0   ;;  %s644_s0 = inlined_call_operand.vmem [shape: f32[16,128], index: 0, kind: input, shape index: {}]   ;;  %s645_s1 = inlined_call_operand.vmem [shape: f32[16,128], index: 1, kind: input, shape index: {}]   ;;  %s646_s2 = inlined_call_operand.vmem [shape: f32[128,256], index: 2, kind: input, shape index: {}]   ;;  %s647_s3 = inlined_call_operand.vmem [shape: f32[128,256], index: 3, kind: input, shape index: {}]   ;;  %s648_s4 = inlined_call_operand.vmem [shape: f32[1,128], index: 4, kind: input, shape index: {}]   ;;  %s649_s5 = inlined_call_operand.hbm [shape: f32[16,128], index: 5, kind: output, shape index: {}]  }
   0x1   :  { %v58_v0 = vld [vmem:[%s647_s3 + $0x8] sm:$0xff]  ;;  %v60_v1 = vld [vmem:[%s647_s3 + $0x18] sm:$0xff]  ;;  %v57_v5 = vld [vmem:[%s647_s3] sm:$0xff]  ;;  %153 = vmatprep.mubr.f32.mxu1 %v387_v7  ;;  %230 = vmatprep.mubr.f32.mxu0 %v387_v7 }
   0x2   :  { %v26_v2 = vld [vmem:[%s646_s2 + $0x8] sm:$0xff]  ;;  %v291_v3 = vpack.c.bf16 %v60_v1, %v58_v0  ;;  %v28_v4 = vld [vmem:[%s646_s2 + $0x18] sm:$0xff]  ;;  %v59_v6 = vld [vmem:[%s647_s3 + $0x10] sm:$0xff] }
   0x3   :  { %v323_v8 = vpack.c.bf16 %v28_v4, %v26_v2  ;;  %v293_v9 = vpack.c.bf16 %v59_v6, %v57_v5  ;;  %v25_v10 = vld [vmem:[%s646_s2] sm:$0xff]  ;;  %v27_v11 = vld [vmem:[%s646_s2 + $0x10] sm:$0xff]  ;;  %v62_v12 = vld [vmem:[%s647_s3 + $0x28] sm:$0xff] }
   0x4   :  { %292 = vmatprep.subr.bf16.mxu1 %v291_v3  ;;  %v325_v13 = vpack.c.bf16 %v27_v11, %v25_v10  ;;  %v64_v14 = vld [vmem:[%s647_s3 + $0x38] sm:$0xff]  ;;  %v30_v15 = vld [vmem:[%s646_s2 + $0x28] sm:$0xff]  ;;  %v61_v19 = vld [vmem:[%s647_s3 + $0x20] sm:$0xff] }
   0x5   :  { %v32_v16 = vld [vmem:[%s646_s2 + $0x38] sm:$0xff]  ;;  %324 = vmatprep.subr.bf16.mxu0 %v323_v8  ;;  %294 = vmatpush1.bf16.msra.mxu1 %v293_v9  ;;  %v295_v17 = vpack.c.bf16 %v64_v14, %v62_v12  ;;  %v63_v20 = vld [vmem:[%s647_s3 + $0x30] sm:$0xff]  ;;  %v29_v21 = vld [vmem:[%s646_s2 + $0x20] sm:$0xff] }
   0x6   :  { %v327_v18 = vpack.c.bf16 %v32_v16, %v30_v15  ;;  %326 = vmatpush1.bf16.msra.mxu0 %v325_v13  ;;  %v297_v22 = vpack.c.bf16 %v63_v20, %v61_v19  ;;  %v31_v23 = vld [vmem:[%s646_s2 + $0x30] sm:$0xff]  ;;  %v66_v24 = vld [vmem:[%s647_s3 + $0x48] sm:$0xff]  ;;  %v68_v25 = vld [vmem:[%s647_s3 + $0x58] sm:$0xff] }
   0x7   :  { %296 = vmatprep.subr.bf16.mxu1 %v295_v17  ;;  %v329_v26 = vpack.c.bf16 %v31_v23, %v29_v21  ;;  %v299_v27 = vpack.c.bf16 %v68_v25, %v66_v24  ;;  %v34_v28 = vld [vmem:[%s646_s2 + $0x48] sm:$0xff]  ;;  %v36_v29 = vld [vmem:[%s646_s2 + $0x58] sm:$0xff]  ;;  %v65_v30 = vld [vmem:[%s647_s3 + $0x40] sm:$0xff] }
   0x8   :  { %328 = vmatprep.subr.bf16.mxu0 %v327_v18  ;;  %v331_v31 = vpack.c.bf16 %v36_v29, %v34_v28  ;;  %v67_v32 = vld [vmem:[%s647_s3 + $0x50] sm:$0xff]  ;;  %v33_v33 = vld [vmem:[%s646_s2 + $0x40] sm:$0xff]  ;;  %v70_v36 = vld [vmem:[%s647_s3 + $0x68] sm:$0xff] }
   0x9   :  { %v35_v34 = vld [vmem:[%s646_s2 + $0x50] sm:$0xff]  ;;  %298 = vmatpush1.bf16.msra.mxu1 %v297_v22  ;;  %v301_v35 = vpack.c.bf16 %v67_v32, %v65_v30  ;;  %v72_v37 = vld [vmem:[%s647_s3 + $0x78] sm:$0xff]  ;;  %v38_v38 = vld [vmem:[%s646_s2 + $0x68] sm:$0xff] }
   0xa   :  { %330 = vmatpush1.bf16.msra.mxu0 %v329_v26  ;;  %300 = vmatprep.subr.bf16.mxu1 %v299_v27  ;;  %v333_v39 = vpack.c.bf16 %v35_v34, %v33_v33  ;;  %v303_v40 = vpack.c.bf16 %v72_v37, %v70_v36  ;;  %v40_v41 = vld [vmem:[%s646_s2 + $0x78] sm:$0xff]  ;;  %v69_v42 = vld [vmem:[%s647_s3 + $0x60] sm:$0xff]  ;;  %v71_v43 = vld [vmem:[%s647_s3 + $0x70] sm:$0xff] }
   0xb   :  { %332 = vmatprep.subr.bf16.mxu0 %v331_v31  ;;  %v335_v44 = vpack.c.bf16 %v40_v41, %v38_v38  ;;  %v37_v45 = vld [vmem:[%s646_s2 + $0x60] sm:$0xff]  ;;  %v39_v46 = vld [vmem:[%s646_s2 + $0x70] sm:$0xff]  ;;  %v74_v47 = vld [vmem:[%s647_s3 + $0x88] sm:$0xff]  ;;  %v305_v51 = vpack.c.bf16 %v71_v43, %v69_v42 }
   0xc   :  { %v76_v48 = vld [vmem:[%s647_s3 + $0x98] sm:$0xff]  ;;  %v42_v49 = vld [vmem:[%s646_s2 + $0x88] sm:$0xff]  ;;  %v337_v52 = vpack.c.bf16 %v39_v46, %v37_v45  ;;  %v73_v54 = vld [vmem:[%s647_s3 + $0x80] sm:$0xff] }
   0xd   :  { %v44_v50 = vld [vmem:[%s646_s2 + $0x98] sm:$0xff]  ;;  %302 = vmatpush1.bf16.msra.mxu1 %v301_v35  ;;  %v307_v53 = vpack.c.bf16 %v76_v48, %v74_v47  ;;  %v75_v55 = vld [vmem:[%s647_s3 + $0x90] sm:$0xff]  ;;  %v41_v56 = vld [vmem:[%s646_s2 + $0x80] sm:$0xff] }
   0xe   :  { %334 = vmatpush1.bf16.msra.mxu0 %v333_v39  ;;  %304 = vmatprep.subr.bf16.mxu1 %v303_v40  ;;  %v339_v57 = vpack.c.bf16 %v44_v50, %v42_v49  ;;  %v43_v58 = vld [vmem:[%s646_s2 + $0x90] sm:$0xff]  ;;  %v78_v59 = vld [vmem:[%s647_s3 + $0xa8] sm:$0xff]  ;;  %v80_v60 = vld [vmem:[%s647_s3 + $0xb8] sm:$0xff]  ;;  %v309_v63 = vpack.c.bf16 %v75_v55, %v73_v54 }
   0xf   :  { %336 = vmatprep.subr.bf16.mxu0 %v335_v44  ;;  %v46_v61 = vld [vmem:[%s646_s2 + $0xa8] sm:$0xff]  ;;  %v48_v62 = vld [vmem:[%s646_s2 + $0xb8] sm:$0xff]  ;;  %v341_v0 = vpack.c.bf16 %v43_v58, %v41_v56  ;;  %v311_v1 = vpack.c.bf16 %v80_v60, %v78_v59  ;;  %v77_v2 = vld [vmem:[%s647_s3 + $0xa0] sm:$0xff] }
  0x10   :  { %v79_v3 = vld [vmem:[%s647_s3 + $0xb0] sm:$0xff]  ;;  %v45_v4 = vld [vmem:[%s646_s2 + $0xa0] sm:$0xff]  ;;  %v343_v5 = vpack.c.bf16 %v48_v62, %v46_v61  ;;  %v82_v8 = vld [vmem:[%s647_s3 + $0xc8] sm:$0xff] }
  0x11   :  { %306 = vmatpush1.bf16.msra.mxu1 %v305_v51  ;;  %v47_v6 = vld [vmem:[%s646_s2 + $0xb0] sm:$0xff]  ;;  %v84_v9 = vld [vmem:[%s647_s3 + $0xd8] sm:$0xff]  ;;  %v50_v10 = vld [vmem:[%s646_s2 + $0xc8] sm:$0xff]  ;;  %v313_v12 = vpack.c.bf16 %v79_v3, %v77_v2 }
  0x12   :  { %338 = vmatpush1.bf16.msra.mxu0 %v337_v52  ;;  %308 = vmatprep.subr.bf16.mxu1 %v307_v53  ;;  %v52_v11 = vld [vmem:[%s646_s2 + $0xd8] sm:$0xff]  ;;  %v81_v13 = vld [vmem:[%s647_s3 + $0xc0] sm:$0xff]  ;;  %v345_v14 = vpack.c.bf16 %v47_v6, %v45_v4  ;;  %v315_v15 = vpack.c.bf16 %v84_v9, %v82_v8  ;;  %v83_v16 = vld [vmem:[%s647_s3 + $0xd0] sm:$0xff] }
  0x13   :  { %340 = vmatprep.subr.bf16.mxu0 %v339_v57  ;;  %v49_v17 = vld [vmem:[%s646_s2 + $0xc0] sm:$0xff]  ;;  %v51_v18 = vld [vmem:[%s646_s2 + $0xd0] sm:$0xff]  ;;  %v347_v19 = vpack.c.bf16 %v52_v11, %v50_v10  ;;  %v86_v20 = vld [vmem:[%s647_s3 + $0xe8] sm:$0xff] }
  0x14   :  { %v88_v21 = vld [vmem:[%s647_s3 + $0xf8] sm:$0xff] }
  0x15   :  { %310 = vmatpush1.bf16.msra.mxu1 %v309_v63 }
  0x16   :  { %342 = vmatpush1.bf16.msra.mxu0 %v341_v0  ;;  %312 = vmatprep.subr.bf16.mxu1 %v311_v1 }
  0x17   :  { %344 = vmatprep.subr.bf16.mxu0 %v343_v5 }
  0x18   :  { %10 = vsyncpa [#allocation3], 0  ;;  %v54_v22 = vld [vmem:[%s646_s2 + $0xe8] sm:$0xff]  ;;  %v56_v23 = vld [vmem:[%s646_s2 + $0xf8] sm:$0xff]  ;;  %v317_v24 = vpack.c.bf16 %v83_v16, %v81_v13  ;;  %v349_v25 = vpack.c.bf16 %v51_v18, %v49_v17  ;;  %v319_v26 = vpack.c.bf16 %v88_v21, %v86_v20 }
  0x19   :  { %314 = vmatpush1.bf16.msra.mxu1 %v313_v12  ;;  %v85_v27 = vld [vmem:[%s647_s3 + $0xe0] sm:$0xff]  ;;  %v87_v28 = vld [vmem:[%s647_s3 + $0xf0] sm:$0xff]  ;;  %v351_v29 = vpack.c.bf16 %v56_v23, %v54_v22  ;;  %v24_v36 = vld [vmem:[%s645_s1 + $0x8] sm:$0xff] }
  0x1a   :  { %346 = vmatpush1.bf16.msra.mxu0 %v345_v14  ;;  %316 = vmatprep.subr.bf16.mxu1 %v315_v15  ;;  %v53_v30 = vld [vmem:[%s646_s2 + $0xe0] sm:$0xff]  ;;  %v55_v31 = vld [vmem:[%s646_s2 + $0xf0] sm:$0xff]  ;;  %v321_v32 = vpack.c.bf16 %v87_v28, %v85_v27  ;;  %v22_v37 = vld [vmem:[%s644_s0 + $0x8] sm:$0xff] }
  0x1b   :  { %348 = vmatprep.subr.bf16.mxu0 %v347_v19  ;;  %v353_v33 = vpack.c.bf16 %v55_v31, %v53_v30  ;;  %v23_v34 = vld [vmem:[%s645_s1] sm:$0xff] }
  0x1c   :  { %v21_v35 = vld [vmem:[%s644_s0] sm:$0xff]  ;;  %s388_s0 = smov [#allocation2]  }
  0x1d   :  { %318 = vmatpush1.bf16.msra.mxu1 %v317_v24 }
  0x1e   :  { %350 = vmatpush1.bf16.msra.mxu0 %v349_v25  ;;  %320 = vmatprep.subr.bf16.mxu1 %v319_v26 }
  0x1f   :  { %352 = vmatprep.subr.bf16.mxu0 %v351_v29 }
  0x21   :  { %322 = vmatpush1.bf16.msra.mxu1 %v321_v32 }
  0x22   :  { %354 = vmatpush1.bf16.msra.mxu0 %v353_v33 }
  0x24   :  { %154 = vmatmul.mubr.f32.vlgmr.msra.gmra.mrb[0].mxu1 %v23_v34 }
  0x25   :  { %231 = vmatmul.mubr.f32.vlgmr.msra.gmra.mrb[0].mxu0 %v21_v35  ;;  %159 = vmatprep.mubr.f32.mxu1 %v387_v7 }
  0x26   :  { %236 = vmatprep.mubr.f32.mxu0 %v387_v7  ;;  %v290_v7 = vld [vmem:[%s648_s4] ss:$0 sm:$0xff]  ;;  %s279_s4 = sshll.u32 %s388_s0, 4  ;;  %s280_s4 = int_to_ptr.vmem [resolvable:$true] %s279_s4 }
  0x27   :  { %s363_s28 = scalar_lea.vmem %s280_s4, 256  ;;  %p368_p1 = scmp.lt.s32.totalorder %s280_s4, %s280_s4 }
  0x28   :  { %160 = vmatmul.mubr.f32.gmra.mrb[2].mxu1 %v24_v36  ;;  %p364_p0 = scmp.ne.s32.totalorder %s280_s4, %s363_s28  ;;  %p369_p2 = scmp.lt.s32.totalorder %s363_s28, %s363_s28 }
  0x29   :  { %237 = vmatmul.mubr.f32.gmra.mrb[2].mxu0 %v22_v37 }
  0x2a   :  { %p370_p3 = por %p369_p2, %p368_p1 }
  0x2c   :  { %p371_p4 = pnand %p370_p3, %p364_p0 }
  0xf7   :  { %v155_v38 = vpop.f32.mrb[0].mxu1 }
  0xf8   :  { %v232_v39 = vpop.f32.mrb[0].mxu0  ;;  %v157_v40 = vpop.f32.mrb[1].mxu1 }
  0xf9   :  { %v233_v41 = vadd.f32 %v232_v39, %v155_v38  ;;  %v234_v42 = vpop.f32.mrb[1].mxu0 }
  0xfa   :  { %v235_v43 = vadd.f32 %v234_v42, %v157_v40 }
  0xfb   :  { %vm243_vm0 = vcmp.gt.f32.partialorder %v233_v41, 0.0  ;;  %v247_v44 = vmul.f32 0.2, %v233_v41  ;;  %v161_v45 = vpop.f32.mrb[2].mxu1 }
  0xfc   :  { %v238_v46 = vpop.f32.mrb[2].mxu0  ;;  %v163_v47 = vpop.f32.mrb[3].mxu1  ;;  %v248_v49 = vmul.f32 0.2, %v235_v43  ;;  %vm244_vm1 = vcmp.gt.f32.partialorder %v235_v43, 0.0 }
  0xfd   :  { %v251_v48 = vsel %vm243_vm0, %v233_v41, %v247_v44  ;;  %v239_v50 = vadd.f32 %v238_v46, %v161_v45  ;;  %v240_v51 = vpop.f32.mrb[3].mxu0 }
  0xfe   :  { %v255_v52 = vadd.f32 1.0, %v251_v48  ;;  %v241_v53 = vadd.f32 %v240_v51, %v163_v47  ;;  %v252_v56 = vsel %vm244_vm1, %v235_v43, %v248_v49 }
  0xff   :  { %vm245_vm2 = vcmp.gt.f32.partialorder %v239_v50, 0.0  ;;  %v249_v54 = vmul.f32 0.2, %v239_v50 }
 0x100   :  { %v264_v55 = vmul.f32 %v290_v7, %v255_v52  ;;  %v250_v58 = vmul.f32 0.2, %v241_v53  ;;  %vm246_vm3 = vcmp.gt.f32.partialorder %v241_v53, 0.0 }
 0x101   :  { %v253_v57 = vsel %vm245_vm2, %v239_v50, %v249_v54 }
 0x102   :  { %v266_v59 = vadd.f32 %v264_v55, %v252_v56  ;;  %v256_v60 = vadd.f32 1.0, %v253_v57  ;;  %v254_v63 = vsel %vm246_vm3, %v241_v53, %v250_v58 }
 0x104   :  { %v268_v61 = vadd.f32 %v266_v59, %v21_v35  ;;  %v265_v62 = vmul.f32 %v290_v7, %v256_v60 }
 0x106   :  { %v267_v0 = vadd.f32 %v265_v62, %v254_v63  ;;  %v270_v1 = vsub.f32 %v268_v61, %v23_v34 }
 0x108   :  { %v269_v2 = vadd.f32 %v267_v0, %v22_v37  ;;  %272 = vst [vmem:[#allocation2] sm:$0xff] %v270_v1 }
 0x10a   :  { %v271_v3 = vsub.f32 %v269_v2, %v24_v36 }
 0x10c   :  { %273 = vst [vmem:[#allocation2 + $0x8] sm:$0xff] %v271_v3 }
 0x10d   :  { %374 = shalt.err (!%p371_p4)
}
 0x10e   :  { %s375_s6 = scalar_lea.hbm %s649_s5, 256 }
 0x10f   :  { %p376_p5 = scmp.ne.s32.totalorder %s649_s5, %s375_s6  ;;  %p379_p6 = scmp.lt.u32.totalorder %s375_s6, %s649_s5 }
 0x111   :  { %p381_p7 = pnand %p379_p6, %p376_p5 }
 0x113   :  { %384 = shalt.err (!%p381_p7)
}
 0x114   :  { %s389_s11 = smov 128   ;;  %s390_s12 = smov 8  }
 0x115   :  { %285 = dma.vmem_to_hbm [thread:$0]  %s280_s4, 256, %s649_s5, [#allocation3], %s389_s11, %s389_s11, %s390_s12  }
 0x116   :  { %385 = dma.done.wait [#allocation3], 256  }
 0x117   :  { %386 = vsyncadd [#allocation3], 4294967040 }
 0x118   :  { %289 = vsyncpa [#allocation3], 1 }

</bundles_post_ra>
